<compile_context>
chip_gen: v5e
topology: v5e:2x2
jax: 0.10.0
libtpu: 0.0.40
codegen_flags: <defaults>
</compile_context>

<pallas_src>
import functools
import math

import jax
import jax.numpy as jnp
from jax.experimental import pallas as pl
from jax.experimental.pallas import tpu as pltpu


_VMEM_LIMIT_BYTES = 48 * 1024 * 1024  # > 32 MiB scoped default, < v7x 64 MiB physical


def _choose_tile(dim, preferred, align):
    """Largest tile <= preferred that is a multiple of `align` and divides `dim`.
    Falls back to the full extent (always legal per the (8,128) BlockSpec rule)."""
    if dim <= preferred or dim % align != 0:
        return dim
    t = (preferred // align) * align
    while t >= align:
        if dim % t == 0:
            return t
        t -= align
    return dim


# ---------------------------------------------------------------------------
# Tiled linear kernels:  out = x @ W^T (+ b), bf16 operands, f32 accumulation.
# ---------------------------------------------------------------------------
def _linear_bias_kernel(x_ref, w_ref, b_ref, o_ref, acc_ref):
    @pl.when(pl.program_id(2) == 0)
    def _():
        acc_ref[...] = jnp.zeros_like(acc_ref)

    acc_ref[...] += jnp.dot(x_ref[...], w_ref[...],
                            preferred_element_type=jnp.float32)

    @pl.when(pl.program_id(2) == pl.num_programs(2) - 1)
    def _():
        o_ref[...] = (acc_ref[...] + b_ref[...]).astype(o_ref.dtype)


def _linear_nobias_kernel(x_ref, w_ref, o_ref, acc_ref):
    @pl.when(pl.program_id(2) == 0)
    def _():
        acc_ref[...] = jnp.zeros_like(acc_ref)

    acc_ref[...] += jnp.dot(x_ref[...], w_ref[...],
                            preferred_element_type=jnp.float32)

    @pl.when(pl.program_id(2) == pl.num_programs(2) - 1)
    def _():
        o_ref[...] = acc_ref[...].astype(o_ref.dtype)


def pallas_linear(x2d, weight, bias, out_dtype,
                  tm_pref=256, tn_pref=256, tk_pref=512):
    """x2d: (M, K); weight: (Nout, K) [torch layout]; bias: (Nout,) or None."""
    M, K = x2d.shape
    Nout = weight.shape[0]

    x_bf = x2d.astype(jnp.bfloat16)
    wt_bf = weight.T.astype(jnp.bfloat16)  # (K, Nout)

    tm = _choose_tile(M, tm_pref, 8)
    tn = _choose_tile(Nout, tn_pref, 128)
    tk = _choose_tile(K, tk_pref, 128)

    grid = (M // tm, Nout // tn, K // tk)

    x_spec = pl.BlockSpec((tm, tk), lambda i, j, k: (i, k))
    w_spec = pl.BlockSpec((tk, tn), lambda i, j, k: (k, j))
    o_spec = pl.BlockSpec((tm, tn), lambda i, j, k: (i, j))

    cost = pl.CostEstimate(
        flops=2 * M * K * Nout,
        transcendentals=0,
        bytes_accessed=(M * K + K * Nout) * 2
        + M * Nout * jnp.dtype(out_dtype).itemsize,
    )
    cparams = pltpu.CompilerParams(
        dimension_semantics=("parallel", "parallel", "arbitrary"),
        vmem_limit_bytes=_VMEM_LIMIT_BYTES,
    )

    if bias is None:
        return pl.pallas_call(
            _linear_nobias_kernel,
            out_shape=jax.ShapeDtypeStruct((M, Nout), out_dtype),
            grid_spec=pltpu.PrefetchScalarGridSpec(
                num_scalar_prefetch=0,
                grid=grid,
                in_specs=[x_spec, w_spec],
                out_specs=o_spec,
                scratch_shapes=[pltpu.VMEM((tm, tn), jnp.float32)],
            ),
            compiler_params=cparams,
            cost_estimate=cost,
        )(x_bf, wt_bf)

    b2d = bias.reshape(1, Nout).astype(jnp.float32)
    b_spec = pl.BlockSpec((1, tn), lambda i, j, k: (0, j))
    return pl.pallas_call(
        _linear_bias_kernel,
        out_shape=jax.ShapeDtypeStruct((M, Nout), out_dtype),
        grid_spec=pltpu.PrefetchScalarGridSpec(
            num_scalar_prefetch=0,
            grid=grid,
            in_specs=[x_spec, w_spec, b_spec],
            out_specs=o_spec,
            scratch_shapes=[pltpu.VMEM((tm, tn), jnp.float32)],
        ),
        compiler_params=cparams,
        cost_estimate=cost,
    )(x_bf, wt_bf, b2d)


# ---------------------------------------------------------------------------
# Flash attention kernel.  One (batch, q-tile, kv-tile) step; all heads per
# step via a static per-head loop (2-D MXU dots, no in-kernel transposes).
#   q_ref/k_ref/v_ref : (tq|tk, H, D)  bf16   (views of the fused QKV output)
#   mask_ref          : (tq, tk)       int8   (broadcast over heads)
#   o_ref             : (tq, H, D)     out dtype
#   scratch           : m,l (H, tq, 1) f32 ; acc (H, tq, D) f32
# ---------------------------------------------------------------------------
def _flash_attn_kernel(q_ref, k_ref, v_ref, mask_ref, o_ref,
                       m_scr, l_scr, acc_scr, *, num_heads, scale):
    ki = pl.program_id(2)

    @pl.when(ki == 0)
    def _init():
        m_scr[...] = jnp.full(m_scr.shape, -jnp.inf, dtype=jnp.float32)
        l_scr[...] = jnp.zeros_like(l_scr)
        acc_scr[...] = jnp.zeros_like(acc_scr)

    # Mask compare hoisted out of the head loop (same for every head).
    neg_mask = mask_ref[...] == 0  # (tq, tk) bool

    for h in range(num_heads):  # static unroll over heads
        q_h = q_ref[:, h, :] * scale            # (tq, D) bf16, scale on q tile
        k_h = k_ref[:, h, :]                    # (tk, D) bf16
        v_h = v_ref[:, h, :]                    # (tk, D) bf16

        # scores: contract over D without materializing K^T.
        s = jax.lax.dot_general(
            q_h, k_h,
            dimension_numbers=(((1,), (1,)), ((), ())),
            preferred_element_type=jnp.float32)  # (tq, tk) f32
        s = jnp.where(neg_mask, jnp.float32(-1e9), s)

        # online softmax update (f32)
        m_prev = m_scr[h]                                            # (tq, 1)
        m_new = jnp.maximum(m_prev, jnp.max(s, axis=-1, keepdims=True))
        alpha = jnp.exp(m_prev - m_new)
        p = jnp.exp(s - m_new)                                       # (tq, tk)

        l_scr[h] = alpha * l_scr[h] + jnp.sum(p, axis=-1, keepdims=True)
        acc_scr[h] = alpha * acc_scr[h] + jax.lax.dot_general(
            p.astype(v_h.dtype), v_h,
            dimension_numbers=(((1,), (0,)), ((), ())),
            preferred_element_type=jnp.float32)                      # (tq, D)
        m_scr[h] = m_new

    @pl.when(ki == pl.num_programs(2) - 1)
    def _finalize():
        for h in range(num_heads):
            inv_l = pl.reciprocal(l_scr[h], approx=True)             # (tq, 1)
            o_ref[:, h, :] = (acc_scr[h] * inv_l).astype(o_ref.dtype)


def pallas_flash_attention(qkv, mask_i8, num_heads, scale, out_dtype,
                           q_tile=256, kv_tile=512):
    """qkv: (B, N, 3*C) bf16 (fused projection output); mask_i8: (B, N, N) int8.
    Returns (B, N, C) in out_dtype."""
    B, N, C3 = qkv.shape
    C = C3 // 3
    H = num_heads
    assert C % H == 0
    D = C // H

    tq = _choose_tile(N, q_tile, 8)
    tk = _choose_tile(N, kv_tile, 128)

    # Free metadata reshape: channel axis factors as (3, H, D); q/k/v slabs are
    # then addressed purely through the BlockSpec index_map (no HBM transpose).
    qkv5 = qkv.reshape(B, N, 3, H, D)

    kernel = functools.partial(_flash_attn_kernel, num_heads=H, scale=scale)

    cost = pl.CostEstimate(
        flops=4 * B * H * N * N * D,
        transcendentals=B * H * N * N,
        bytes_accessed=4 * B * N * C * 2 + B * N * N,
    )

    out = pl.pallas_call(
        kernel,
        out_shape=jax.ShapeDtypeStruct((B, N, H, D), out_dtype),
        grid_spec=pltpu.PrefetchScalarGridSpec(
            num_scalar_prefetch=0,
            grid=(B, N // tq, N // tk),
            in_specs=[
                # q slab   (block index 0 on the "3" axis)
                pl.BlockSpec((None, tq, None, H, D),
                             lambda b, qi, ki: (b, qi, 0, 0, 0)),
                # k slab   (block index 1)
                pl.BlockSpec((None, tk, None, H, D),
                             lambda b, qi, ki: (b, ki, 1, 0, 0)),
                # v slab   (block index 2)
                pl.BlockSpec((None, tk, None, H, D),
                             lambda b, qi, ki: (b, ki, 2, 0, 0)),
                # int8 mask tile, broadcast over heads
                pl.BlockSpec((None, tq, tk),
                             lambda b, qi, ki: (b, qi, ki)),
            ],
            out_specs=pl.BlockSpec((None, tq, H, D),
                                   lambda b, qi, ki: (b, qi, 0, 0)),
            scratch_shapes=[
                pltpu.VMEM((H, tq, 1), jnp.float32),   # running max
                pltpu.VMEM((H, tq, 1), jnp.float32),   # running sum
                pltpu.VMEM((H, tq, D), jnp.float32),   # output accumulator
            ],
        ),
        compiler_params=pltpu.CompilerParams(
            dimension_semantics=("parallel", "parallel", "arbitrary"),
            vmem_limit_bytes=_VMEM_LIMIT_BYTES,
        ),
        cost_estimate=cost,
    )(qkv5, qkv5, qkv5, mask_i8)

    return out.reshape(B, N, C)  # free reshape (merge heads)


# ---------------------------------------------------------------------------
# Full Attention.forward (non-fused path; qkv_bias=False, qk_norm=False,
# dropouts are identities at p=0).
# ---------------------------------------------------------------------------
def attention_forward(x, mask, params, num_heads):
    B, N, C = x.shape
    head_dim = C // num_heads
    scale = head_dim ** (-0.5)

    # fused QKV projection (no bias), bf16 output feeds the attention kernel
    qkv = pallas_linear(x.reshape(B * N, C), params["qkv_w"], None,
                        out_dtype=jnp.bfloat16)
    qkv = qkv.reshape(B, N, 3 * C)

    # mask (B, 1, N, N) -> int8 (B, N, N); kernel tests == 0 like masked_fill.
    # TODO(synk): attn_drop / proj_drop (p=0.0) and Identity q/k norms omitted.
    mask_i8 = (jnp.broadcast_to(mask, (B, 1, N, N)).reshape(B, N, N) != 0
               ).astype(jnp.int8)

    # flash attention over all heads, output (B, N, C) in bf16
    o = pallas_flash_attention(qkv, mask_i8, num_heads, scale,
                               out_dtype=jnp.bfloat16)

    # output projection (with bias), back to the input dtype
    out = pallas_linear(o.reshape(B * N, C), params["proj_w"], params["proj_b"],
                        out_dtype=x.dtype)
    return out.reshape(B, N, C)


# ---------------------------------------------------------------------------
# Pure-JAX f32 reference (mirrors the PyTorch forward) for a correctness check.
# ---------------------------------------------------------------------------
def attention_forward_ref(x, mask, params, num_heads):
    B, N, C = x.shape
    head_dim = C // num_heads
    scale = head_dim ** (-0.5)
    qkv = x @ params["qkv_w"].T
    qkv = qkv.reshape(B, N, 3, num_heads, head_dim).transpose(2, 0, 3, 1, 4)
    q, k, v = qkv[0], qkv[1], qkv[2]
    attn = (q * scale) @ jnp.swapaxes(k, -2, -1)          # (B, H, N, N)
    m = jnp.broadcast_to(mask, attn.shape)
    attn = jnp.where(m == 0, -1e9, attn)
    attn = jax.nn.softmax(attn, axis=-1)
    o = attn @ v
    o = jnp.transpose(o, (0, 2, 1, 3)).reshape(B, N, C)
    return o @ params["proj_w"].T + params["proj_b"]


if __name__ == "__main__":
    B, N, C = 2, 8, 32
    num_heads = 8

    key = jax.random.PRNGKey(0)
    kx, kqkv, kpw, kpb = jax.random.split(key, 4)

    x = jax.random.normal(kx, (B, N, C), dtype=jnp.float32)

    params = {
        "qkv_w": jax.random.normal(kqkv, (3 * C, C), dtype=jnp.float32)
        * (1.0 / math.sqrt(C)),
        "proj_w": jax.random.normal(kpw, (C, C), dtype=jnp.float32)
        * (1.0 / math.sqrt(C)),
        "proj_b": jax.random.normal(kpb, (C,), dtype=jnp.float32) * 0.01,
    }

    # causal-style 0/1 mask, shape (B, 1, N, N); broadcasts over heads
    mask = jnp.tril(jnp.ones((N, N), dtype=jnp.float32))
    mask = jnp.broadcast_to(mask, (B, 1, N, N))

    out = attention_forward(x, mask, params, num_heads)
    out = jax.block_until_ready(out)

    ref = attention_forward_ref(x, mask, params, num_heads)
    assert out.shape == (B, N, C)
    max_err = float(jnp.max(jnp.abs(out - ref)))
    # bf16 matmul operands + approx reciprocal -> loose tolerance vs f32 reference
    assert max_err < 1e-1, f"mismatch vs reference: max abs err {max_err}"

    print("KERNEL_OK")
</pallas_src>

<mosaic_0001>
module attributes {stable_mosaic.version = 11 : i64} {
  func.func @_linear_nobias_kernel(%arg0: i32, %arg1: i32, %arg2: i32, %arg3: memref<16x32xbf16, #tpu.memory_space<vmem>>, %arg4: memref<32x96xbf16, #tpu.memory_space<vmem>>, %arg5: memref<16x96xbf16, #tpu.memory_space<vmem>>, %arg6: memref<16x96xf32, #tpu.memory_space<vmem>>) attributes {dimension_semantics = [#tpu.dimension_semantics<parallel>, #tpu.dimension_semantics<parallel>, #tpu.dimension_semantics<arbitrary>], iteration_bounds = array<i64: 1, 1, 1>, scalar_prefetch = 0 : i64, scratch_operands = 1 : i64, tpu.core_type = #tpu.core_type<tc>, window_params = [{transform_indices = @transform_0, window_bounds = array<i64: 16, 32>}, {transform_indices = @transform_1, window_bounds = array<i64: 32, 96>}, {transform_indices = @transform_2, window_bounds = array<i64: 16, 96>}]} {
    %c0_i32 = arith.constant 0 : i32
    %0 = arith.cmpi eq, %arg2, %c0_i32 : i32
    %1 = arith.extui %0 : i1 to i32
    %c0_i32_0 = arith.constant 0 : i32
    %2 = arith.cmpi ne, %1, %c0_i32_0 : i32
    scf.if %2 {
      %cst_10 = arith.constant 0.000000e+00 : f32
      %12 = vector.broadcast %cst_10 : f32 to vector<16x96xf32>
      %c0_11 = arith.constant 0 : index
      %c0_12 = arith.constant 0 : index
      %13 = vector.load %arg6[%c0_11, %c0_12] : memref<16x96xf32, #tpu.memory_space<vmem>>, vector<16x96xf32>
      tpu.vector_store %arg6[%c0_11, %c0_12], %12 {strides = array<i32>} : memref<16x96xf32, #tpu.memory_space<vmem>>, vector<16x96xf32>,
    } else {
    }
    %c0 = arith.constant 0 : index
    %c0_1 = arith.constant 0 : index
    %3 = vector.load %arg6[%c0, %c0_1] : memref<16x96xf32, #tpu.memory_space<vmem>>, vector<16x96xf32>
    %c0_2 = arith.constant 0 : index
    %c0_3 = arith.constant 0 : index
    %4 = vector.load %arg3[%c0_2, %c0_3] : memref<16x32xbf16, #tpu.memory_space<vmem>>, vector<16x32xbf16>
    %c0_4 = arith.constant 0 : index
    %c0_5 = arith.constant 0 : index
    %5 = vector.load %arg4[%c0_4, %c0_5] : memref<32x96xbf16, #tpu.memory_space<vmem>>, vector<32x96xbf16>
    %cst = arith.constant dense<0.000000e+00> : vector<16x96xf32>
    %6 = tpu.matmul %4, %5, %cst {dimension_numbers = #tpu.dot_dimension_numbers<[1], [0], [0], [1], [0, 0, 1, 1], [], []>} : vector<16x32xbf16>, vector<32x96xbf16>, vector<16x96xf32> -> vector<16x96xf32>
    %7 = arith.addf %3, %6 : vector<16x96xf32>
    %c0_6 = arith.constant 0 : index
    %c0_7 = arith.constant 0 : index
    %8 = vector.load %arg6[%c0_6, %c0_7] : memref<16x96xf32, #tpu.memory_space<vmem>>, vector<16x96xf32>
    tpu.vector_store %arg6[%c0_6, %c0_7], %7 {strides = array<i32>} : memref<16x96xf32, #tpu.memory_space<vmem>>, vector<16x96xf32>,
    %c0_i32_8 = arith.constant 0 : i32
    %9 = arith.cmpi eq, %arg2, %c0_i32_8 : i32
    %10 = arith.extui %9 : i1 to i32
    %c0_i32_9 = arith.constant 0 : i32
    %11 = arith.cmpi ne, %10, %c0_i32_9 : i32
    scf.if %11 {
      %c0_10 = arith.constant 0 : index
      %c0_11 = arith.constant 0 : index
      %12 = vector.load %arg6[%c0_10, %c0_11] : memref<16x96xf32, #tpu.memory_space<vmem>>, vector<16x96xf32>
      %13 = arith.truncf %12 : vector<16x96xf32> to vector<16x96xbf16>
      %c0_12 = arith.constant 0 : index
      %c0_13 = arith.constant 0 : index
      %14 = vector.load %arg5[%c0_12, %c0_13] : memref<16x96xbf16, #tpu.memory_space<vmem>>, vector<16x96xbf16>
      tpu.vector_store %arg5[%c0_12, %c0_13], %13 {strides = array<i32>} : memref<16x96xbf16, #tpu.memory_space<vmem>>, vector<16x96xbf16>,
    } else {
    }
    return
  }
  func.func @transform_0(%arg0: i32, %arg1: i32, %arg2: i32) -> (i32, i32) {
    %c0_i32 = arith.constant 0 : i32
    return %arg0, %arg2 : i32, i32
  }
  func.func @transform_1(%arg0: i32, %arg1: i32, %arg2: i32) -> (i32, i32) {
    %c0_i32 = arith.constant 0 : i32
    return %arg2, %arg1 : i32, i32
  }
  func.func @transform_2(%arg0: i32, %arg1: i32, %arg2: i32) -> (i32, i32) {
    %c0_i32 = arith.constant 0 : i32
    return %arg0, %arg1 : i32, i32
  }
}

</mosaic_0001>

<bundles_post_ra>
// kernel: tpu_custom_call.1
= control target key start
LH: loop header
LB: loop body
LE: loop exit
PB: predicated region body
PF: predicated region fallthrough
CT: control target
= control target key end

     0   :  { %7 = vsyncpa [#allocation4], 0  ;;  %s273_s0 = inlined_call_operand.hbm [shape: bf16[16,32], index: 0, kind: input, shape index: {}]   ;;  %s274_s1 = inlined_call_operand.hbm [shape: bf16[32,96], index: 1, kind: input, shape index: {}]   ;;  %s275_s2 = inlined_call_operand.hbm [shape: bf16[16,96], index: 2, kind: output, shape index: {}]  }
   0x1   :  { %8 = vsyncpa [#allocation7], 0 }
   0x2   :  { %9 = vsyncpa [#allocation5], 0  ;;  %s14_s11 = sshll.u32 %s273_s0, 4  ;;  %s230_s12 = smov [#allocation3]   ;;  %s15_s11 = int_to_ptr.hbm [resolvable:$true] %s14_s11 }
   0x3   :  { %s16_s13 = sshll.u32 %s230_s12, 4  ;;  %s27_s16 = sshll.u32 %s274_s1, 4  ;;  %s17_s13 = int_to_ptr.vmem [resolvable:$true] %s16_s13  ;;  %s28_s16 = int_to_ptr.hbm [resolvable:$true] %s27_s16 }
   0x4   :  { %s231_s17 = smov 64   ;;  %s232_s18 = smov 4  }
   0x5   :  { %22 = dma.hbm_to_vmem [thread:$0]  %s15_s11, 128, %s17_s13, [#allocation4], %s231_s17, %s231_s17, %s232_s18  }
   0x6   :  { %s233_s19 = smov [#allocation6]  }
   0x7   :  { %s29_s20 = sshll.u32 %s233_s19, 4  ;;  %s30_s20 = int_to_ptr.vmem [resolvable:$true] %s29_s20 }
   0x8   :  { %35 = dma.hbm_to_vmem [thread:$0]  %s28_s16, 256, %s30_s20, [#allocation7], %s231_s17, %s231_s17, %s232_s18  }
   0x9   :  { %224 = dma.done.wait [#allocation4], 128  }
   0xa   :  { %225 = vsyncadd [#allocation4], 4294967168 }
   0xb   :  { %226 = dma.done.wait [#allocation7], 256  }
   0xc   :  { %227 = vsyncadd [#allocation7], 4294967040  ;;  %vm49_vm0 = vcmask 785408   ;;  %v234_v0 = vmov 0.0   ;;  %v145_v1 = vld [vmem:[#allocation6 + $0x8] sm:$0xff]  ;;  %v144_v2 = vld [vmem:[#allocation6] sm:$0xff] }
   0xd   :  { %50 = vst.msk [vmem:[#allocation2] sm:$0xff] %vm49_vm0, %v234_v0  ;;  %87 = vmatpush.bf16.msra.mxu0 %v145_v1  ;;  %v143_v3 = vld [vmem:[#allocation3] sm:$0xff]  ;;  %vm77_vm1 = vcmask 261120   ;;  %vm107_vm2 = vcmask 781312   ;;  %s235_s0 = smov [#allocation8]   ;;  %s116_s23 = sshll.u32 %s275_s2, 4  ;;  %s117_s23 = int_to_ptr.hbm [resolvable:$true] %s116_s23 }
   0xe   :  { %51 = vst.msk [vmem:[#allocation2 + $0x8] sm:$0xff] %vm49_vm0, %v234_v0  ;;  %s114_s1 = sshll.u32 %s235_s0, 4  ;;  %s115_s1 = int_to_ptr.vmem [resolvable:$true] %s114_s1 }
  0x11   :  { %88 = vmatpush.bf16.msra.mxu0 %v144_v2 }
  0x14   :  { %142 = vmatmul.msk.bf16.vlgmr.msra.gmra.mxu0 %vm77_vm1, %v143_v3  ;;  %v52_v4 = vld [vmem:[#allocation2] sm:$0xff] }
  0x15   :  { %v53_v7 = vld [vmem:[#allocation2 + $0x8] sm:$0xff] }
  0x91   :  { %v90_v5 = vpop.f32.mrf.mxu0 }
  0x92   :  { %v95_v6 = vadd.f32 %v90_v5, %v52_v4 }
  0x94   :  { %98 = vst.msk [vmem:[#allocation2] sm:$0xff] %vm49_vm0, %v95_v6 }
  0x99   :  { %v92_v8 = vpop.f32.mrf.mxu0 }
  0x9a   :  { %v96_v9 = vadd.f32 %v92_v8, %v53_v7 }
  0x9b   :  { %v103_v10 = vld [vmem:[#allocation2] sm:$0xff] }
  0x9c   :  { %99 = vst.msk [vmem:[#allocation2 + $0x8] sm:$0xff] %vm49_vm0, %v96_v9  ;;  %v105_v11 = vpack.c.bf16 %v103_v10, %v103_v10 }
  0x9e   :  { %108 = vst.msk [vmem:[#allocation8] sm:$0xf] %vm107_vm2, %v105_v11 }
  0xa3   :  { %v104_v12 = vld [vmem:[#allocation2 + $0x8] sm:$0xff] }
  0xa4   :  { %v106_v13 = vpack.c.bf16 %v104_v12, %v104_v12 }
  0xa6   :  { %109 = vst.msk [vmem:[#allocation8 + $0x4] sm:$0xf] %vm107_vm2, %v106_v13 }
  0xa7   :  { %122 = dma.vmem_to_hbm [thread:$0]  %s115_s1, 128, %s117_s23, [#allocation5], %s231_s17, %s231_s17, %s232_s18  }
  0xa8   :  { %228 = dma.done.wait [#allocation5], 128  }
  0xa9   :  { %229 = vsyncadd [#allocation5], 4294967168 }
  0xaa   :  { %127 = vsyncpa [#allocation4], 1 }
  0xab   :  { %128 = vsyncpa [#allocation7], 1 }
  0xac   :  { %129 = vsyncpa [#allocation5], 1 }

</bundles_post_ra>
